<compile_context>
chip_gen: v6e
topology: v6e:2x2x1
jax: 0.10.0
libtpu: 0.0.40
codegen_flags: <defaults>
</compile_context>

<pallas_src>
import math
from functools import lru_cache, partial

import jax
import jax.numpy as jnp
from jax.experimental import pallas as pl
from jax.experimental.pallas import tpu as pltpu


# ------------------------------ small helpers ---------------------------------
@lru_cache(maxsize=None)
def _vmem_limit_bytes():
    """~85% of physical VMEM: raises v5e/v6e 16/32 MiB scoped defaults, stays under
    v7x's 64 MiB physical VMEM."""
    try:
        cap = int(pltpu.get_tpu_info().vmem_capacity_bytes)
    except Exception:
        cap = 64 * 1024 * 1024
    return max(int(cap * 0.85), 32 * 1024 * 1024)


def _mosaic_params(dimension_semantics):
    return pltpu.CompilerParams(dimension_semantics=dimension_semantics,
                                vmem_limit_bytes=_vmem_limit_bytes())


def _const_spec(shape, index_map):
    """BlockSpec for a constant-index-map operand: fetched once -> single buffer
    (halves its VMEM footprint vs. the default double buffer)."""
    buffered = getattr(pl, "Buffered", None)
    if buffered is not None:
        try:
            return pl.BlockSpec(shape, index_map, pipeline_mode=buffered(1))
        except TypeError:
            pass
    return pl.BlockSpec(shape, index_map)


def _pick_row_tile(n, target):
    """Largest row tile <= target dividing n; prefers 16-multiples (bf16 sublane
    packing), then 8-multiples; full extent otherwise."""
    if n <= target:
        return n
    for mult in (16, 8):
        d = target - target % mult
        while d >= mult:
            if n % d == 0:
                return d
            d -= mult
    # TODO(synk): production ragged shapes (e.g. tokens_per_frame=1350) need padding to a
    # 16-row multiple plus masked tails instead of this full-extent fallback.
    return n


def _pick_lane_tile(n, target):
    """Lane-dim (last-dim) tile: must be a 128-multiple, or the full extent."""
    if n <= target:
        return n
    d = target - target % 128
    while d >= 128:
        if n % d == 0:
            return d
        d -= 128
    return n


# --------------- per-head LayerNorm on a lane-dense (rows, H*D) tile -----------
def _per_head_layernorm(y, avg_ref, exp_ref, gh_ref, bh_ref, eps):
    """LayerNorm over each head's D-lane group of a lane-dense (rows, H*D) f32 tile.

    Per-head mean / variance are computed with two tiny block-diagonal matmuls
    (reduce (HD,H) 'avg' then broadcast back (H,HD) 'expand'), so the whole epilogue
    is lane-dense MXU/VPU work: no cross-lane XLU reductions, no head loop."""
    f32, bf16 = jnp.float32, jnp.bfloat16
    avg = avg_ref[...]
    expd = exp_ref[...]
    mean = jnp.dot(jnp.dot(y.astype(bf16), avg, preferred_element_type=f32).astype(bf16),
                   expd, preferred_element_type=f32)
    yc = y - mean
    var = jnp.dot(jnp.dot((yc * yc).astype(bf16), avg, preferred_element_type=f32).astype(bf16),
                  expd, preferred_element_type=f32)
    return yc * jax.lax.rsqrt(var + eps) * gh_ref[...] + bh_ref[...]


# -------------------- kernel 1/2: norm1 (+gather) + proj + head-LN -------------
def _norm1_proj_kernel(x_ref, g1_ref, b1_ref, w_ref, avg_ref, exp_ref, gh_ref, bh_ref,
                       o_ref, *, ln_eps, head_eps):
    x = x_ref[...].astype(jnp.float32)                                   # (TS, C)
    mu = jnp.mean(x, axis=-1, keepdims=True)
    var = jnp.mean(jnp.square(x - mu), axis=-1, keepdims=True)
    xn = ((x - mu) * jax.lax.rsqrt(var + ln_eps) * g1_ref[...] + b1_ref[...]).astype(jnp.bfloat16)
    y = jnp.dot(xn, w_ref[...], preferred_element_type=jnp.float32)      # (TS, H*D)
    o_ref[...] = _per_head_layernorm(y, avg_ref, exp_ref, gh_ref, bh_ref,
                                     head_eps).astype(o_ref.dtype)


def _norm1_proj_gather_kernel(idx_ref, x_ref, g1_ref, b1_ref, w_ref, avg_ref, exp_ref,
                              gh_ref, bh_ref, o_ref, *, ln_eps, head_eps):
    del idx_ref  # consumed only by the index_maps (frame gather)
    _norm1_proj_kernel(x_ref, g1_ref, b1_ref, w_ref, avg_ref, exp_ref, gh_ref, bh_ref,
                       o_ref, ln_eps=ln_eps, head_eps=head_eps)


def norm1_proj(x, g1, b1, w_bf16, avg, expd, gh, bh, *, ln_eps, head_eps,
               out_dtype=jnp.bfloat16, tile=512):
    """out = per_head_LN(LayerNorm(x) @ w)."""
    B, S, C = x.shape
    HD = w_bf16.shape[1]
    H = avg.shape[1]
    ts = _pick_row_tile(S, tile)
    return pl.pallas_call(
        partial(_norm1_proj_kernel, ln_eps=ln_eps, head_eps=head_eps),
        out_shape=jax.ShapeDtypeStruct((B, S, HD), out_dtype),
        grid=(B, S // ts),
        in_specs=[
            pl.BlockSpec((None, ts, C), lambda b, i: (b, i, 0)),
            _const_spec((1, C), lambda b, i: (0, 0)),
            _const_spec((1, C), lambda b, i: (0, 0)),
            _const_spec((C, HD), lambda b, i: (0, 0)),       # weight resident, 1 buffer
            _const_spec((HD, H), lambda b, i: (0, 0)),
            _const_spec((H, HD), lambda b, i: (0, 0)),
            _const_spec((1, HD), lambda b, i: (0, 0)),
            _const_spec((1, HD), lambda b, i: (0, 0)),
        ],
        out_specs=pl.BlockSpec((None, ts, HD), lambda b, i: (b, i, 0)),
        compiler_params=_mosaic_params(("parallel", "parallel")),
    )(x, g1, b1, w_bf16, avg, expd, gh, bh)


def norm1_proj_gather(x, frame_idx, g1, b1, w_bf16, avg, expd, gh, bh, *,
                      tokens_per_frame, ln_eps, head_eps,
                      out_dtype=jnp.bfloat16, tile=512):
    """out[:, f*L:(f+1)*L] = per_head_LN(LayerNorm(x[:, frame_idx[f]*L:...]) @ w).

    Frame gather is done inside the BlockSpec index_map via scalar prefetch — no HBM
    round-trip for a gathered intermediate."""
    B, S, C = x.shape
    HD = w_bf16.shape[1]
    H = avg.shape[1]
    L = tokens_per_frame
    n_ctrl = int(frame_idx.shape[0])
    Sk = n_ctrl * L
    tk = _pick_row_tile(L, tile)          # tile must stay inside one frame
    tpf = L // tk

    def x_map(b, j, idx_ref):
        return (b, idx_ref[j // tpf] * tpf + j % tpf, 0)

    def const(b, j, idx_ref):
        return (0, 0)

    grid_spec = pltpu.PrefetchScalarGridSpec(
        num_scalar_prefetch=1,
        grid=(B, Sk // tk),
        in_specs=[
            pl.BlockSpec((None, tk, C), x_map),
            _const_spec((1, C), const),
            _const_spec((1, C), const),
            _const_spec((C, HD), const),
            _const_spec((HD, H), const),
            _const_spec((H, HD), const),
            _const_spec((1, HD), const),
            _const_spec((1, HD), const),
        ],
        out_specs=pl.BlockSpec((None, tk, HD), lambda b, j, idx_ref: (b, j, 0)),
    )
    return pl.pallas_call(
        partial(_norm1_proj_gather_kernel, ln_eps=ln_eps, head_eps=head_eps),
        out_shape=jax.ShapeDtypeStruct((B, Sk, HD), out_dtype),
        grid_spec=grid_spec,
        # Output blocks are disjoint across both axes -> megacore-shardable (v7x).
        compiler_params=_mosaic_params(("parallel", "parallel")),
    )(frame_idx, x, g1, b1, w_bf16, avg, expd, gh, bh)


# ------------------------------ kernel 3: to_v ---------------------------------
def _linear_kernel(x_ref, w_ref, o_ref):
    o_ref[...] = jnp.dot(x_ref[...].astype(jnp.bfloat16), w_ref[...],
                         preferred_element_type=jnp.float32).astype(o_ref.dtype)


def linear_nobias(x, w_bf16, *, out_dtype=jnp.bfloat16, tile=512):
    B, S, C = x.shape
    Cout = w_bf16.shape[1]
    ts = _pick_row_tile(S, tile)
    return pl.pallas_call(
        _linear_kernel,
        out_shape=jax.ShapeDtypeStruct((B, S, Cout), out_dtype),
        grid=(B, S // ts),
        in_specs=[
            pl.BlockSpec((None, ts, C), lambda b, i: (b, i, 0)),
            _const_spec((C, Cout), lambda b, i: (0, 0)),
        ],
        out_specs=pl.BlockSpec((None, ts, Cout), lambda b, i: (b, i, 0)),
        compiler_params=_mosaic_params(("parallel", "parallel")),
    )(x, w_bf16)


# --------------------------- kernel 4: flash attention -------------------------
def _attn_kernel(q_ref, k_ref, v_ref, o_ref, m_sc, l_sc, acc_sc, *, heads, head_dim):
    kv = pl.program_id(2)

    @pl.when(kv == 0)
    def _():
        m_sc[...] = jnp.full(m_sc.shape, -jnp.inf, dtype=jnp.float32)
        l_sc[...] = jnp.zeros(l_sc.shape, dtype=jnp.float32)
        acc_sc[...] = jnp.zeros(acc_sc.shape, dtype=jnp.float32)

    # q/k already carry per-head LayerNorm and the 1/sqrt(D) scale (folded into gq/bq),
    # so the inner loop is pure MXU + online-softmax.
    # TODO(synk): at production head counts (30-48) switch this trace-time unroll to
    # lax.fori_loop; Mosaic rejects unaligned dynamic lane slices at this tiny head_dim.
    for h in range(heads):
        lo = h * head_dim
        q = q_ref[:, lo:lo + head_dim]                                   # bf16 (TQ, D)
        k = k_ref[:, lo:lo + head_dim]                                   # bf16 (TKV, D)
        v = v_ref[:, lo:lo + head_dim]                                   # bf16 (TKV, D)

        # contract on the shared D axis directly -> no k transpose / XLU vxpose
        s = jax.lax.dot_general(q, k, (((1,), (1,)), ((), ())),
                                preferred_element_type=jnp.float32)      # (TQ, TKV)

        m_prev = m_sc[h]                                                 # (TQ, 1) whole tile
        m_new = jnp.maximum(m_prev, jnp.max(s, axis=-1, keepdims=True))
        alpha = jnp.exp(m_prev - m_new)
        p = jnp.exp(s - m_new)

        l_sc[h] = alpha * l_sc[h] + jnp.sum(p, axis=-1, keepdims=True)   # compact per-head
        acc_sc[:, lo:lo + head_dim] = alpha * acc_sc[:, lo:lo + head_dim] + jnp.dot(
            p.astype(jnp.bfloat16), v, preferred_element_type=jnp.float32)
        m_sc[h] = m_new

    @pl.when(kv == pl.num_programs(2) - 1)
    def _():
        # exact reciprocal on the compact (heads, TQ, 1) denominator (once per q tile),
        # then a single lane-dense (TQ, H*D) store.
        inv = pl.reciprocal(l_sc[...], approx=False)
        parts = [acc_sc[:, h * head_dim:(h + 1) * head_dim] * inv[h] for h in range(heads)]
        o_ref[...] = jnp.concatenate(parts, axis=-1).astype(o_ref.dtype)


def cross_frame_attention(q, k, v, *, heads, head_dim, q_tile=256, kv_tile=512):
    B, Sq, HD = q.shape
    Skv = k.shape[1]
    tq = _pick_row_tile(Sq, q_tile)
    tkv = _pick_row_tile(Skv, kv_tile)
    # (v5e note: if profiling shows exposed DMA, give the k/v specs pl.Buffered(3).)
    return pl.pallas_call(
        partial(_attn_kernel, heads=heads, head_dim=head_dim),
        out_shape=jax.ShapeDtypeStruct((B, Sq, HD), jnp.bfloat16),
        grid=(B, Sq // tq, Skv // tkv),
        in_specs=[
            pl.BlockSpec((None, tq, HD), lambda b, i, j: (b, i, 0)),
            pl.BlockSpec((None, tkv, HD), lambda b, i, j: (b, j, 0)),
            pl.BlockSpec((None, tkv, HD), lambda b, i, j: (b, j, 0)),
        ],
        out_specs=pl.BlockSpec((None, tq, HD), lambda b, i, j: (b, i, 0)),
        scratch_shapes=[
            pltpu.VMEM((heads, tq, 1), jnp.float32),   # running max, per head
            pltpu.VMEM((heads, tq, 1), jnp.float32),   # running denominator, per head
            pltpu.VMEM((tq, HD), jnp.float32),         # running numerator (lane-dense)
        ],
        compiler_params=_mosaic_params(("parallel", "parallel", "arbitrary")),
    )(q, k, v)


# --------------- kernel 5: to_out + norm2 + FeedForward (K-tiled FF) ------------
def _out_norm_ff_kernel(x_ref, wo_ref, bo_ref, g2_ref, bn2_ref,
                        w1_ref, b1_ref, w2_ref, b2_ref, o_ref,
                        n_sc, acc_sc, *, eps):
    ki = pl.program_id(2)

    @pl.when(ki == 0)
    def _():
        x = x_ref[...].astype(jnp.bfloat16)                              # (TS, H*D)
        h = jnp.dot(x, wo_ref[...], preferred_element_type=jnp.float32) + bo_ref[...]
        mu = jnp.mean(h, axis=-1, keepdims=True)
        var = jnp.mean(jnp.square(h - mu), axis=-1, keepdims=True)
        n_sc[...] = (h - mu) * jax.lax.rsqrt(var + eps) * g2_ref[...] + bn2_ref[...]
        acc_sc[...] = jnp.zeros(acc_sc.shape, dtype=jnp.float32)

    # one K-slice of the FeedForward: Linear -> gelu(tanh) -> Linear (accumulated)
    f = jnp.dot(n_sc[...].astype(jnp.bfloat16), w1_ref[...],
                preferred_element_type=jnp.float32) + b1_ref[...]
    c = 0.7978845608028654  # sqrt(2/pi)
    f = 0.5 * f * (1.0 + jnp.tanh(c * (f + 0.044715 * f * f * f)))
    acc_sc[...] += jnp.dot(f.astype(jnp.bfloat16), w2_ref[...],
                           preferred_element_type=jnp.float32)

    @pl.when(ki == pl.num_programs(2) - 1)
    def _():
        o_ref[...] = (acc_sc[...] + b2_ref[...]).astype(o_ref.dtype)


def out_norm_ff(x, wo_bf, bo, g2, bn2, w1_bf, b1, w2_bf, b2, *, eps, out_dtype,
                tile=256, ff_k_tile=1024):
    B, S, HD = x.shape
    C = wo_bf.shape[1]
    Ci = w1_bf.shape[1]
    Cout = w2_bf.shape[1]
    ts = _pick_row_tile(S, tile)
    tk = _pick_lane_tile(Ci, ff_k_tile)   # FF inner dim is streamed, never fully resident
    return pl.pallas_call(
        partial(_out_norm_ff_kernel, eps=eps),
        out_shape=jax.ShapeDtypeStruct((B, S, Cout), out_dtype),
        grid=(B, S // ts, Ci // tk),
        in_specs=[
            pl.BlockSpec((None, ts, HD), lambda b, i, ki: (b, i, 0)),
            _const_spec((HD, C), lambda b, i, ki: (0, 0)),
            _const_spec((1, C), lambda b, i, ki: (0, 0)),
            _const_spec((1, C), lambda b, i, ki: (0, 0)),
            _const_spec((1, C), lambda b, i, ki: (0, 0)),
            pl.BlockSpec((C, tk), lambda b, i, ki: (0, ki)),   # streamed over ff_inner
            pl.BlockSpec((1, tk), lambda b, i, ki: (0, ki)),
            pl.BlockSpec((tk, Cout), lambda b, i, ki: (ki, 0)),
            _const_spec((1, Cout), lambda b, i, ki: (0, 0)),
        ],
        out_specs=pl.BlockSpec((None, ts, Cout), lambda b, i, ki: (b, i, 0)),
        scratch_shapes=[
            pltpu.VMEM((ts, C), jnp.float32),      # norm2 activations (reused over ki)
            pltpu.VMEM((ts, Cout), jnp.float32),   # f32 FF accumulator
        ],
        compiler_params=_mosaic_params(("parallel", "parallel", "arbitrary")),
    )(x, wo_bf, bo, g2, bn2, w1_bf, b1, w2_bf, b2)


# ------------------------- one-time parameter preparation ----------------------
def prepare_params(p):
    """Host-side prep done ONCE (not per forward): bf16 weight casts, per-head LN
    gamma/beta tiled to (1, H*D) with the 1/sqrt(D) attention scale folded into the q
    affine, and the tiny block-diagonal reduce/expand matrices for per-head LayerNorm."""
    f32, bf16 = jnp.float32, jnp.bfloat16
    H, D = int(p["heads"]), int(p["head_dim"])
    scale = 1.0 / math.sqrt(D)
    eye = jnp.eye(H, dtype=f32)
    expd = jnp.repeat(eye, D, axis=1)                 # (H, H*D): broadcast per-head stats
    avg = expd.T / D                                  # (H*D, H): per-head mean reduce
    return dict(
        heads=H, head_dim=D,
        ln1_g=p["ln1_g"].astype(f32), ln1_b=p["ln1_b"].astype(f32),
        ln2_g=p["ln2_g"].astype(f32), ln2_b=p["ln2_b"].astype(f32),
        wq=p["wq_t"].astype(bf16), wk=p["wk_t"].astype(bf16), wv=p["wv_t"].astype(bf16),
        wo=p["wo_t"].astype(bf16), w1=p["w1_t"].astype(bf16), w2=p["w2_t"].astype(bf16),
        bo=p["bo"].astype(f32), b1=p["b1"].astype(f32), b2=p["b2"].astype(f32),
        avg=avg.astype(bf16), expd=expd.astype(bf16),
        gq=jnp.tile(p["lnq_g"].reshape(1, D) * scale, (1, H)).astype(f32),
        bq=jnp.tile(p["lnq_b"].reshape(1, D) * scale, (1, H)).astype(f32),
        gk=jnp.tile(p["lnk_g"].reshape(1, D), (1, H)).astype(f32),
        bk=jnp.tile(p["lnk_b"].reshape(1, D), (1, H)).astype(f32),
    )


# ------------------------------ Full block -------------------------------------
def cross_frame_block(hidden_states, sketch_hidden_states, control_frame_index,
                      temb, num_frames, prep, *, seq_tile=512, q_tile=256, kv_tile=512,
                      ff_seq_tile=256, ff_k_tile=1024):
    del temb  # unused by the torch forward; kept for signature parity
    B, S, C = hidden_states.shape
    L = S // num_frames
    H, D = prep["heads"], prep["head_dim"]

    idx = jnp.asarray(control_frame_index, dtype=jnp.int32)
    assert sketch_hidden_states.shape[1] == int(idx.shape[0]) * L, \
        "sketch tokens must match the selected key frames"

    # kernel 1: norm1 + to_q + per-head q-LayerNorm (1/sqrt(D) folded into gq/bq)
    q = norm1_proj(hidden_states, prep["ln1_g"], prep["ln1_b"], prep["wq"],
                   prep["avg"], prep["expd"], prep["gq"], prep["bq"],
                   ln_eps=1e-5, head_eps=1e-6, tile=seq_tile)
    # kernel 2: norm1 (control frames, gathered in the index_map) + to_k + per-head k-LN
    k = norm1_proj_gather(hidden_states, idx, prep["ln1_g"], prep["ln1_b"], prep["wk"],
                          prep["avg"], prep["expd"], prep["gk"], prep["bk"],
                          tokens_per_frame=L, ln_eps=1e-5, head_eps=1e-6, tile=seq_tile)
    # kernel 3: to_v on the sketch tokens (attention_bias=False -> no bias)
    v = linear_nobias(sketch_hidden_states, prep["wv"], tile=seq_tile)

    # kernel 4: flash attention (q/k already normalized and scaled)
    o = cross_frame_attention(q, k, v, heads=H, head_dim=D,
                              q_tile=q_tile, kv_tile=kv_tile)

    # kernel 5: to_out + norm2 + FeedForward (no residual connections in the reference)
    return out_norm_ff(o, prep["wo"], prep["bo"], prep["ln2_g"], prep["ln2_b"],
                       prep["w1"], prep["b1"], prep["w2"], prep["b2"],
                       eps=1e-5, out_dtype=hidden_states.dtype,
                       tile=ff_seq_tile, ff_k_tile=ff_k_tile)


# ------------------------- pure-JAX reference (check) ---------------------------
def _reference(hidden_states, sketch, control_frame_index, num_frames, p):
    B, S, C = hidden_states.shape
    T, L = num_frames, S // num_frames
    H, D = p["heads"], p["head_dim"]

    def ln(x, g, b, eps):
        m = x.mean(-1, keepdims=True)
        v = ((x - m) ** 2).mean(-1, keepdims=True)
        return (x - m) / jnp.sqrt(v + eps) * g + b

    nh = ln(hidden_states, p["ln1_g"], p["ln1_b"], 1e-5)
    idx = jnp.asarray(control_frame_index, dtype=jnp.int32)
    kn = nh.reshape(B, T, L, C)[:, idx].reshape(B, -1, C)
    q, k, v = nh @ p["wq_t"], kn @ p["wk_t"], sketch @ p["wv_t"]
    qh = q.reshape(B, -1, H, D).transpose(0, 2, 1, 3)
    kh = k.reshape(B, -1, H, D).transpose(0, 2, 1, 3)
    vh = v.reshape(B, -1, H, D).transpose(0, 2, 1, 3)
    qh = ln(qh, p["lnq_g"], p["lnq_b"], 1e-6)
    kh = ln(kh, p["lnk_g"], p["lnk_b"], 1e-6)
    s = jnp.einsum("bhqd,bhkd->bhqk", qh, kh) / math.sqrt(D)
    a = jax.nn.softmax(s, axis=-1)
    o = jnp.einsum("bhqk,bhkd->bhqd", a, vh).transpose(0, 2, 1, 3).reshape(B, -1, H * D)
    o = o @ p["wo_t"] + p["bo"]
    n2 = ln(o, p["ln2_g"], p["ln2_b"], 1e-5)
    h = n2 @ p["w1_t"] + p["b1"]
    c = math.sqrt(2.0 / math.pi)
    h = 0.5 * h * (1.0 + jnp.tanh(c * (h + 0.044715 * h ** 3)))
    return h @ p["w2_t"] + p["b2"]


if __name__ == "__main__":
    # small test shapes: dim=128, heads=4, head_dim=32, 4 frames x 16 tokens, ff mult=2
    B, T, L, C, H = 2, 4, 16, 128, 4
    D = C // H
    S = T * L
    control_frame_index = [0, 2]
    Sk = len(control_frame_index) * L
    ff_inner = 2 * C  # mult=2

    key = jax.random.PRNGKey(0)
    ks = jax.random.split(key, 20)

    def w(k_, shape, scale=0.1):
        return jax.random.normal(k_, shape, jnp.float32) * scale

    hidden_states = jax.random.normal(ks[0], (B, S, C), jnp.float32)
    sketch_hidden_states = jax.random.normal(ks[1], (B, Sk, C), jnp.float32)
    temb = jax.random.normal(ks[2], (B, C), jnp.float32)  # unused by the forward

    params = dict(
        heads=H, head_dim=D,
        ln1_g=1.0 + w(ks[3], (1, C), 0.05), ln1_b=w(ks[4], (1, C), 0.05),
        wq_t=w(ks[5], (C, H * D)), wk_t=w(ks[6], (C, H * D)), wv_t=w(ks[7], (C, H * D)),
        lnq_g=1.0 + w(ks[8], (1, D), 0.05), lnq_b=w(ks[9], (1, D), 0.05),
        lnk_g=1.0 + w(ks[10], (1, D), 0.05), lnk_b=w(ks[11], (1, D), 0.05),
        wo_t=w(ks[12], (H * D, C)), bo=w(ks[13], (1, C), 0.05),
        ln2_g=1.0 + w(ks[14], (1, C), 0.05), ln2_b=w(ks[15], (1, C), 0.05),
        w1_t=w(ks[16], (C, ff_inner)), b1=w(ks[17], (1, ff_inner), 0.05),
        w2_t=w(ks[18], (ff_inner, C)), b2=w(ks[19], (1, C), 0.05),
    )

    prep = prepare_params(params)  # one-time: bf16 casts, scale folding, LN matrices

    # ff_k_tile=128 -> two K-steps over ff_inner=256, exercising the accumulator path
    out = cross_frame_block(hidden_states, sketch_hidden_states, control_frame_index,
                            temb, T, prep, ff_k_tile=128)
    out = jax.block_until_ready(out)

    ref = _reference(hidden_states, sketch_hidden_states, control_frame_index, T, params)
    assert out.shape == (B, S, C), out.shape
    assert bool(jnp.all(jnp.isfinite(out)))
    # bf16 MXU inputs (weights, q/k/p, activations) vs. a pure-f32 reference: typical
    # per-element error ~1e-2 after five chained matmul stages.
    err = float(jnp.max(jnp.abs(out - ref)))
    assert bool(jnp.allclose(out, ref, atol=1e-1, rtol=5e-2)), f"max abs diff {err}"

    print("KERNEL_OK")
</pallas_src>

<mosaic_0001>
module attributes {stable_mosaic.version = 11 : i64} {
  func.func @_norm1_proj_kernel(%arg0: i32, %arg1: i32, %arg2: memref<1x64x128xf32, #tpu.memory_space<vmem>>, %arg3: memref<1x128xf32, #tpu.memory_space<vmem>>, %arg4: memref<1x128xf32, #tpu.memory_space<vmem>>, %arg5: memref<128x128xbf16, #tpu.memory_space<vmem>>, %arg6: memref<128x4xbf16, #tpu.memory_space<vmem>>, %arg7: memref<4x128xbf16, #tpu.memory_space<vmem>>, %arg8: memref<1x128xf32, #tpu.memory_space<vmem>>, %arg9: memref<1x128xf32, #tpu.memory_space<vmem>>, %arg10: memref<1x64x128xbf16, #tpu.memory_space<vmem>>) attributes {dimension_semantics = [#tpu.dimension_semantics<parallel>, #tpu.dimension_semantics<parallel>], iteration_bounds = array<i64: 2, 1>, scalar_prefetch = 0 : i64, scratch_operands = 0 : i64, tpu.core_type = #tpu.core_type<tc>, window_params = [{transform_indices = @transform_0, window_bounds = array<i64: 1, 64, 128>}, {pipeline_mode = #tpu.pipeline_mode<synchronous>, transform_indices = @transform_1, window_bounds = array<i64: 1, 128>}, {pipeline_mode = #tpu.pipeline_mode<synchronous>, transform_indices = @transform_2, window_bounds = array<i64: 1, 128>}, {pipeline_mode = #tpu.pipeline_mode<synchronous>, transform_indices = @transform_3, window_bounds = array<i64: 128, 128>}, {pipeline_mode = #tpu.pipeline_mode<synchronous>, transform_indices = @transform_4, window_bounds = array<i64: 128, 4>}, {pipeline_mode = #tpu.pipeline_mode<synchronous>, transform_indices = @transform_5, window_bounds = array<i64: 4, 128>}, {pipeline_mode = #tpu.pipeline_mode<synchronous>, transform_indices = @transform_6, window_bounds = array<i64: 1, 128>}, {pipeline_mode = #tpu.pipeline_mode<synchronous>, transform_indices = @transform_7, window_bounds = array<i64: 1, 128>}, {transform_indices = @transform_8, window_bounds = array<i64: 1, 64, 128>}]} {
    %c0 = arith.constant 0 : index
    %c0_0 = arith.constant 0 : index
    %c0_1 = arith.constant 0 : index
    %0 = vector.load %arg2[%c0, %c0_0, %c0_1] : memref<1x64x128xf32, #tpu.memory_space<vmem>>, vector<1x64x128xf32>
    %1 = vector.shape_cast %0 : vector<1x64x128xf32> to vector<64x128xf32>
    %cst = arith.constant dense<0.000000e+00> : vector<64xf32>
    %2 = vector.multi_reduction <add>, %1, %cst [1] : vector<64x128xf32> to vector<64xf32>
    %3 = vector.shape_cast %2 : vector<64xf32> to vector<64x1xf32>
    %cst_2 = arith.constant 1.280000e+02 : f32
    %4 = vector.broadcast %cst_2 : f32 to vector<64x1xf32>
    %5 = arith.divf %3, %4 : vector<64x1xf32>
    %6 = vector.broadcast %5 : vector<64x1xf32> to vector<64x128xf32>
    %7 = arith.subf %1, %6 : vector<64x128xf32>
    %8 = arith.mulf %7, %7 : vector<64x128xf32>
    %cst_3 = arith.constant dense<0.000000e+00> : vector<64xf32>
    %9 = vector.multi_reduction <add>, %8, %cst_3 [1] : vector<64x128xf32> to vector<64xf32>
    %10 = vector.shape_cast %9 : vector<64xf32> to vector<64x1xf32>
    %cst_4 = arith.constant 1.280000e+02 : f32
    %11 = vector.broadcast %cst_4 : f32 to vector<64x1xf32>
    %12 = arith.divf %10, %11 : vector<64x1xf32>
    %13 = vector.broadcast %5 : vector<64x1xf32> to vector<64x128xf32>
    %14 = arith.subf %1, %13 : vector<64x128xf32>
    %cst_5 = arith.constant 9.99999974E-6 : f32
    %15 = vector.broadcast %cst_5 : f32 to vector<64x1xf32>
    %16 = arith.addf %12, %15 : vector<64x1xf32>
    %17 = math.rsqrt %16 : vector<64x1xf32>
    %18 = vector.broadcast %17 : vector<64x1xf32> to vector<64x128xf32>
    %19 = arith.mulf %14, %18 : vector<64x128xf32>
    %c0_6 = arith.constant 0 : index
    %c0_7 = arith.constant 0 : index
    %20 = vector.load %arg3[%c0_6, %c0_7] : memref<1x128xf32, #tpu.memory_space<vmem>>, vector<1x128xf32>
    %21 = vector.broadcast %20 : vector<1x128xf32> to vector<64x128xf32>
    %22 = arith.mulf %19, %21 : vector<64x128xf32>
    %c0_8 = arith.constant 0 : index
    %c0_9 = arith.constant 0 : index
    %23 = vector.load %arg4[%c0_8, %c0_9] : memref<1x128xf32, #tpu.memory_space<vmem>>, vector<1x128xf32>
    %24 = vector.broadcast %23 : vector<1x128xf32> to vector<64x128xf32>
    %25 = arith.addf %22, %24 : vector<64x128xf32>
    %26 = arith.truncf %25 : vector<64x128xf32> to vector<64x128xbf16>
    %c0_10 = arith.constant 0 : index
    %c0_11 = arith.constant 0 : index
    %27 = vector.load %arg5[%c0_10, %c0_11] : memref<128x128xbf16, #tpu.memory_space<vmem>>, vector<128x128xbf16>
    %cst_12 = arith.constant dense<0.000000e+00> : vector<64x128xf32>
    %28 = tpu.matmul %26, %27, %cst_12 {dimension_numbers = #tpu.dot_dimension_numbers<[1], [0], [0], [1], [0, 0, 1, 1], [], []>} : vector<64x128xbf16>, vector<128x128xbf16>, vector<64x128xf32> -> vector<64x128xf32>
    %c0_13 = arith.constant 0 : index
    %c0_14 = arith.constant 0 : index
    %29 = vector.load %arg6[%c0_13, %c0_14] : memref<128x4xbf16, #tpu.memory_space<vmem>>, vector<128x4xbf16>
    %c0_15 = arith.constant 0 : index
    %c0_16 = arith.constant 0 : index
    %30 = vector.load %arg7[%c0_15, %c0_16] : memref<4x128xbf16, #tpu.memory_space<vmem>>, vector<4x128xbf16>
    %31 = arith.truncf %28 : vector<64x128xf32> to vector<64x128xbf16>
    %cst_17 = arith.constant dense<0.000000e+00> : vector<64x4xf32>
    %32 = tpu.matmul %31, %29, %cst_17 {dimension_numbers = #tpu.dot_dimension_numbers<[1], [0], [0], [1], [0, 0, 1, 1], [], []>} : vector<64x128xbf16>, vector<128x4xbf16>, vector<64x4xf32> -> vector<64x4xf32>
    %33 = arith.truncf %32 : vector<64x4xf32> to vector<64x4xbf16>
    %cst_18 = arith.constant dense<0.000000e+00> : vector<64x128xf32>
    %34 = tpu.matmul %33, %30, %cst_18 {dimension_numbers = #tpu.dot_dimension_numbers<[1], [0], [0], [1], [0, 0, 1, 1], [], []>} : vector<64x4xbf16>, vector<4x128xbf16>, vector<64x128xf32> -> vector<64x128xf32>
    %35 = arith.subf %28, %34 : vector<64x128xf32>
    %36 = arith.mulf %35, %35 : vector<64x128xf32>
    %37 = arith.truncf %36 : vector<64x128xf32> to vector<64x128xbf16>
    %cst_19 = arith.constant dense<0.000000e+00> : vector<64x4xf32>
    %38 = tpu.matmul %37, %29, %cst_19 {dimension_numbers = #tpu.dot_dimension_numbers<[1], [0], [0], [1], [0, 0, 1, 1], [], []>} : vector<64x128xbf16>, vector<128x4xbf16>, vector<64x4xf32> -> vector<64x4xf32>
    %39 = arith.truncf %38 : vector<64x4xf32> to vector<64x4xbf16>
    %cst_20 = arith.constant dense<0.000000e+00> : vector<64x128xf32>
    %40 = tpu.matmul %39, %30, %cst_20 {dimension_numbers = #tpu.dot_dimension_numbers<[1], [0], [0], [1], [0, 0, 1, 1], [], []>} : vector<64x4xbf16>, vector<4x128xbf16>, vector<64x128xf32> -> vector<64x128xf32>
    %cst_21 = arith.constant 9.99999997E-7 : f32
    %41 = vector.broadcast %cst_21 : f32 to vector<64x128xf32>
    %42 = arith.addf %40, %41 : vector<64x128xf32>
    %43 = math.rsqrt %42 : vector<64x128xf32>
    %44 = arith.mulf %35, %43 : vector<64x128xf32>
    %c0_22 = arith.constant 0 : index
    %c0_23 = arith.constant 0 : index
    %45 = vector.load %arg8[%c0_22, %c0_23] : memref<1x128xf32, #tpu.memory_space<vmem>>, vector<1x128xf32>
    %46 = vector.broadcast %45 : vector<1x128xf32> to vector<64x128xf32>
    %47 = arith.mulf %44, %46 : vector<64x128xf32>
    %c0_24 = arith.constant 0 : index
    %c0_25 = arith.constant 0 : index
    %48 = vector.load %arg9[%c0_24, %c0_25] : memref<1x128xf32, #tpu.memory_space<vmem>>, vector<1x128xf32>
    %49 = vector.broadcast %48 : vector<1x128xf32> to vector<64x128xf32>
    %50 = arith.addf %47, %49 : vector<64x128xf32>
    %51 = arith.truncf %50 : vector<64x128xf32> to vector<64x128xbf16>
    %c0_26 = arith.constant 0 : index
    %c0_27 = arith.constant 0 : index
    %c0_28 = arith.constant 0 : index
    %52 = vector.load %arg10[%c0_26, %c0_27, %c0_28] : memref<1x64x128xbf16, #tpu.memory_space<vmem>>, vector<1x64x128xbf16>
    %53 = vector.shape_cast %52 : vector<1x64x128xbf16> to vector<64x128xbf16>
    %54 = vector.shape_cast %51 : vector<64x128xbf16> to vector<1x64x128xbf16>
    tpu.vector_store %arg10[%c0_26, %c0_27, %c0_28], %54 {strides = array<i32>} : memref<1x64x128xbf16, #tpu.memory_space<vmem>>, vector<1x64x128xbf16>,
    return
  }
  func.func @transform_0(%arg0: i32, %arg1: i32) -> (i32, i32, i32) {
    %c0_i32 = arith.constant 0 : i32
    %c0_i32_0 = arith.constant 0 : i32
    return %arg0, %arg1, %c0_i32 : i32, i32, i32
  }
  func.func @transform_1(%arg0: i32, %arg1: i32) -> (i32, i32) {
    %c0_i32 = arith.constant 0 : i32
    %c0_i32_0 = arith.constant 0 : i32
    %c0_i32_1 = arith.constant 0 : i32
    return %c0_i32, %c0_i32_0 : i32, i32
  }
  func.func @transform_2(%arg0: i32, %arg1: i32) -> (i32, i32) {
    %c0_i32 = arith.constant 0 : i32
    %c0_i32_0 = arith.constant 0 : i32
    %c0_i32_1 = arith.constant 0 : i32
    return %c0_i32, %c0_i32_0 : i32, i32
  }
  func.func @transform_3(%arg0: i32, %arg1: i32) -> (i32, i32) {
    %c0_i32 = arith.constant 0 : i32
    %c0_i32_0 = arith.constant 0 : i32
    %c0_i32_1 = arith.constant 0 : i32
    return %c0_i32, %c0_i32_0 : i32, i32
  }
  func.func @transform_4(%arg0: i32, %arg1: i32) -> (i32, i32) {
    %c0_i32 = arith.constant 0 : i32
    %c0_i32_0 = arith.constant 0 : i32
    %c0_i32_1 = arith.constant 0 : i32
    return %c0_i32, %c0_i32_0 : i32, i32
  }
  func.func @transform_5(%arg0: i32, %arg1: i32) -> (i32, i32) {
    %c0_i32 = arith.constant 0 : i32
    %c0_i32_0 = arith.constant 0 : i32
    %c0_i32_1 = arith.constant 0 : i32
    return %c0_i32, %c0_i32_0 : i32, i32
  }
  func.func @transform_6(%arg0: i32, %arg1: i32) -> (i32, i32) {
    %c0_i32 = arith.constant 0 : i32
    %c0_i32_0 = arith.constant 0 : i32
    %c0_i32_1 = arith.constant 0 : i32
    return %c0_i32, %c0_i32_0 : i32, i32
  }
  func.func @transform_7(%arg0: i32, %arg1: i32) -> (i32, i32) {
    %c0_i32 = arith.constant 0 : i32
    %c0_i32_0 = arith.constant 0 : i32
    %c0_i32_1 = arith.constant 0 : i32
    return %c0_i32, %c0_i32_0 : i32, i32
  }
  func.func @transform_8(%arg0: i32, %arg1: i32) -> (i32, i32, i32) {
    %c0_i32 = arith.constant 0 : i32
    %c0_i32_0 = arith.constant 0 : i32
    return %arg0, %arg1, %c0_i32 : i32, i32, i32
  }
}

</mosaic_0001>

<bundles_post_ra>
// kernel: tpu_custom_call.1
= control target key start
LH: loop header
LB: loop body
LE: loop exit
PB: predicated region body
PF: predicated region fallthrough
CT: control target
= control target key end

     0   :  { %13 = vsyncpa [#allocation3], 0  ;;  %s2017_s0 = inlined_call_operand.hbm [shape: f32[2,64,128], index: 0, kind: input, shape index: {}]   ;;  %s2018_s1 = inlined_call_operand.vmem [shape: f32[1,128], index: 1, kind: input, shape index: {}]   ;;  %s2019_s2 = inlined_call_operand.vmem [shape: f32[1,128], index: 2, kind: input, shape index: {}]   ;;  %s2020_s3 = inlined_call_operand.vmem [shape: bf16[128,128], index: 3, kind: input, shape index: {}]   ;;  %s2021_s4 = inlined_call_operand.vmem [shape: bf16[128,4], index: 4, kind: input, shape index: {}]   ;;  %s2022_s5 = inlined_call_operand.vmem [shape: bf16[4,128], index: 5, kind: input, shape index: {}]   ;;  %s2023_s6 = inlined_call_operand.vmem [shape: f32[1,128], index: 6, kind: input, shape index: {}]   ;;  %s2024_s7 = inlined_call_operand.vmem [shape: f32[1,128], index: 7, kind: input, shape index: {}]   ;;  %s2025_s8 = inlined_call_operand.hbm [shape: bf16[2,64,128], index: 8, kind: output, shape index: {}]  }
   0x1   :  { %15 = vsyncpa [#allocation3 + $0x1], 0 }
   0x2   :  { %16 = vsyncpa [#allocation4], 0 }
   0x3   :  { %18 = vsyncpa [#allocation4 + $0x1], 0  ;;  %s1679_s27 = smov 0   ;;  %s1681_s28 = smov 0  }
   0x4   :  { %s1683_s29 = smov 0   ;;  %s1685_s30 = smov 0  }
   0x5   :  { %s1687_s9 = smov 0   ;;  %s1689_s10 = smov 0  }
   0x6 LB: > { %2028 = sst [smem:[#allocation8_spill]] %s1622_s9  ;;  %s1180_s11 = sadd.s32 4294967295, %s1626_s10   ;;  %s1626_s10 = sphi %s1689_s10, %s24_s10   ;;  %s1622_s9 = sphi %s1687_s9, %s2037_s9   ;;  %s1618_s30 = sphi %s1685_s30, %s2036_s30   ;;  %s1614_s29 = sphi %s1683_s29, %s2040_s29   ;;  %s1610_s28 = sphi %s1681_s28, %s2039_s28   ;;  %s1606_s27 = sphi %s1679_s27, %s2038_s27  }
   0x7   : > { %s1181_s12 = sadd.s32 4294967294, %s1626_s10   ;;  %s36_s13 = sadd.s32 1, %s1622_s9 }
   0x8   : > { %s45_s14 = sadd.s32 1, %s1614_s29  ;;  %p38_p0 = scmp.ge.s32.totalorder %s36_s13, 2 }
   0x9   : > { %p52_p1 = scmp.ne.s32.totalorder %s1614_s29, %s1610_s28  ;;  %p53_p2 = scmp.eq.s32.totalorder %s1626_s10, 0 }
   0xa   : > { %p58_p3 = scmp.ne.s32.totalorder %s1610_s28, %s1606_s27  ;;  %s2042_s13 = smov (%p38_p0, %s36_s13), 0 }
   0xb   : > { %2029 = sst [smem:[#allocation9_spill]] %s2042_s13  ;;  %p1720_p4 = por %p53_p2, %p52_p1 }
   0xc   : > { %p59_p5 = scmp.eq.s32.totalorder %s1180_s11, 0  ;;  %s40_s16 = ssub.s32 %s1622_s9, %s2042_s13 }
   0xd   : > { %p231_p6 = scmp.eq.s32.totalorder %s1180_s11, 1  ;;  %p43_p7 = scmp.eq.s32.totalorder %s40_s16, 0 }
   0xe   : > { %p1726_p8 = por %p59_p5, %p58_p3  ;;  %p237_p10 = scmp.eq.s32.totalorder %s1181_s12, 1 }
   0xf   : > { %p1730_p9 = por %p231_p6, %p52_p1  ;;  %p1416_p13 = scmp.lt.s32.totalorder %s1626_s10, 2 }
  0x10   : > { %s1735_s19 = scalar_select %p43_p7, %s1614_s29, %s45_s14  }
  0x11   : > { %p1737_p11 = por %p237_p10, %p58_p3  ;;  %s278_s21 = sand.u32 1, %s1614_s29  }
  0x12   : > { %s1184_s22 = sshll.u32 %s278_s21, 6  ;;  %s1231_s23 = sshll.u32 %s1622_s9, 10 }
  0x13   : > { %s290_s26 = scalar_lea.hbm %s2017_s0, %s1231_s23  ;;  %s282_s11 = scalar_lea.vmem [#allocation2], %s1184_s22 }
  0x14   : > { %s291_s16 = sshll.u32 %s282_s11, 4  ;;  %p1750_p0 = pnand %p1416_p13, %p1720_p4  ;;  %s292_s16 = int_to_ptr.vmem [resolvable:$true] %s291_s16 }
  0x15   : > { %p1187_p1 = scmp.ge.s32.totalorder %s1626_s10, 1  ;;  %s279_s14 = scalar_lea.sflag [#allocation3], %s278_s21 }
  0x16   : > { %p1520_p2 = pneg %p1750_p0  ;;  %s1531_s13 = scalar_lea.vmem %s292_s16, 1024 }
  0x17   : > { %p1532_p3 = scmp.ne.s32.totalorder %s292_s16, %s1531_s13  ;;  %s1628_s9 = smov [#allocation2]  }
  0x18   : > { %s1536_s24 = sshll.u32 %s1628_s9, 4  ;;  %s1537_s24 = int_to_ptr.vmem [resolvable:$false] %s1536_s24 }
  0x19   : > { %p1534_p5 = pnand %p1532_p3, %p1520_p2  ;;  %s1538_s22 = scalar_lea.vmem %s1537_s24, 2048 }
  0x1a   : > { %p1539_p7 = scmp.lt.s32.totalorder %s292_s16, %s1537_s24  ;;  %p1540_p10 = scmp.lt.s32.totalorder %s1538_s22, %s1531_s13 }
  0x1b   : > { %p1535_p6 = pneg %p1534_p5 }
  0x1c   : > { %p1541_p12 = por %p1540_p10, %p1539_p7 }
  0x1e   : > { %p1542_p4 = pnand %p1541_p12, %p1535_p6 }
  0x20   : > { %1545 = shalt.err (!%p1542_p4)
}
  0x21   : > { %s1629_s15 = smov 128   ;;  %s1630_s21 = smov 8  }
  0x22   : > { %1411 = dma.hbm_to_vmem [thread:$0]  (!%p1750_p0), %s290_s26, 1024, %s292_s16, %s279_s14, %s1629_s15, %s1629_s15, %s1630_s21  }
  0x23   : > { %p299_p13 = scmp.lt.s32.totalorder %s1626_s10, 3 }
  0x25   : > { %p300_p2 = pnand %p1187_p1, %p299_p13 }
  0x26   : > { %s1763_s9 = sand.u32 (!%p300_p2), 1, %s1610_s28  }
  0x27   : > { %303 = sbr.rel (%p300_p2) target bundleno = 1419 (0x58b), region = 52  ;;  %s1188_s13 = sshll.u32 (!%p300_p2), %s1763_s9, 6 }
  0x28   : > { %s306_s23 = scalar_lea.sflag (!%p300_p2), [#allocation3], %s1763_s9  ;;  %s309_s25 = scalar_lea.vmem (!%p300_p2), [#allocation2], %s1188_s13 }
  0x2c   : > { %1597 = dma.done.wait (%p1726_p8), %s306_s23, 1024  }
  0x2d   : > { %1599 = vsyncadd (%p1726_p8), %s306_s23, 4294966272  ;;  %v345_v0 = vld [vmem:[%s309_s25] sm:$0xff]  ;;  %v347_v1 = vld [vmem:[%s309_s25 + $0x10] sm:$0xff]  ;;  %vm756_vm0 = vcmask 1041408   ;;  %vm743_vm1 = vcmask 31744   ;;  %s1189_s16 = sshll.u32 %s1763_s9, 5 }
  0x2e   : > { %353 = vadd.xlane.f32.xlu0 %v345_v0  ;;  %357 = vadd.xlane.f32.xlu1 %v347_v1  ;;  %v346_v2 = vld [vmem:[%s309_s25 + $0x8] sm:$0xff]  ;;  %v348_v3 = vld [vmem:[%s309_s25 + $0x18] sm:$0xff]  ;;  %v349_v4 = vld [vmem:[%s309_s25 + $0x20] sm:$0xff]  ;;  %s341_s12 = scalar_lea.vmem [#allocation5], %s1189_s16  ;;  %s1240_s14 = sshll.u32 %s1618_s30, 9 }
  0x2f   : > { %v350_v5 = vld [vmem:[%s309_s25 + $0x28] sm:$0xff]  ;;  %v351_v6 = vld [vmem:[%s309_s25 + $0x30] sm:$0xff]  ;;  %v352_v7 = vld [vmem:[%s309_s25 + $0x38] sm:$0xff]  ;;  %s1093_s24 = sshll.u32 %s341_s12, 4  ;;  %s1967_s21 = scalar_lea.hbm %s2025_s8, %s1240_s14  ;;  %s1969_s24 = int_to_ptr.vmem [resolvable:$true] %s1093_s24 }
  0x30   : > { %v1470_v39 = vld [vmem:[%s2020_s3 + $0x38] sm:$0xff]   ;;  %v1471_v41 = vld [vmem:[%s2020_s3 + $0x30] sm:$0xff]   ;;  %v1472_v42 = vld [vmem:[%s2020_s3 + $0x28] sm:$0xff]   ;;  %s1078_s13 = scalar_lea.sflag [#allocation4], %s1763_s9  ;;  %s1546_s23 = scalar_lea.vmem %s1969_s24, 512 }
  0x31   : > { %1310 = vmatprep.subr.bf16.mxu0 %v1470_v39  ;;  %v1473_v43 = vld [vmem:[%s2020_s3 + $0x20] sm:$0xff]   ;;  %v1474_v44 = vld [vmem:[%s2020_s3 + $0x18] sm:$0xff]   ;;  %v1475_v45 = vld [vmem:[%s2020_s3 + $0x10] sm:$0xff]   ;;  %p1547_p8 = scmp.ne.s32.totalorder %s1969_s24, %s1546_s23  ;;  %s1631_s30 = smov [#allocation5]  }
  0x32   : > { %355 = vadd.xlane.f32.xlu0 %v346_v2  ;;  %359 = vadd.xlane.f32.xlu1 %v348_v3  ;;  %v1476_v46 = vld [vmem:[%s2020_s3 + $0x8] sm:$0xff]   ;;  %v1477_v47 = vld [vmem:[%s2020_s3] sm:$0xff]   ;;  %v1830_v48 = vld [vmem:[%s2021_s4 + $0x38] sm:$0xff]   ;;  %s1550_s25 = sshll.u32 %s1631_s30, 4  ;;  %s1551_s25 = int_to_ptr.vmem [resolvable:$false] %s1550_s25 }
  0x33   : > { %1311 = vmatpush3.bf16.msra.mxu0 %v1470_v39  ;;  %v1835_v49 = vld [vmem:[%s2021_s4 + $0x30] sm:$0xff]   ;;  %1334 = vmatprep.subr.bf16.mxu1 %v1830_v48  ;;  %v1843_v50 = vld [vmem:[%s2021_s4 + $0x28] sm:$0xff]   ;;  %v1850_v51 = vld [vmem:[%s2021_s4 + $0x20] sm:$0xff]   ;;  %p1548_p12 = pnand %p1547_p8, %p1730_p9  ;;  %s1552_s17 = scalar_lea.vmem %s1551_s25, 1024 }
  0x34   : > { %1312 = vmatprep.subr.bf16.mxu0 %v1471_v41  ;;  %1335 = vmatpush3.bf16.msra.mxu1 %v1830_v48  ;;  %v1857_v52 = vld [vmem:[%s2021_s4 + $0x18] sm:$0xff]   ;;  %v1864_v53 = vld [vmem:[%s2021_s4 + $0x10] sm:$0xff]   ;;  %p1553_p1 = scmp.lt.s32.totalorder %s1969_s24, %s1551_s25  ;;  %p1554_p3 = scmp.lt.s32.totalorder %s1552_s17, %s1546_s23 }
  0x35   : > { %1336 = vmatprep.subr.bf16.mxu1 %v1835_v49  ;;  %p1549_p0 = pneg %p1548_p12 }
  0x36   : > { %361 = vadd.xlane.f32.xlu0 %v349_v4  ;;  %363 = vadd.xlane.f32.xlu1 %v350_v5  ;;  %p1555_p5 = por %p1554_p3, %p1553_p1 }
  0x37   : > { %1313 = vmatpush3.bf16.msra.mxu0 %v1471_v41 }
  0x38   : > { %1314 = vmatprep.subr.bf16.mxu0 %v1472_v42  ;;  %1337 = vmatpush3.bf16.msra.mxu1 %v1835_v49  ;;  %p1556_p6 = pnand %p1555_p5, %p1549_p0 }
  0x39   : > { %1338 = vmatprep.subr.bf16.mxu1 %v1843_v50 }
  0x3a   : > { %365 = vadd.xlane.f32.xlu0 %v351_v6  ;;  %367 = vadd.xlane.f32.xlu1 %v352_v7 }
  0x3b   : > { %1315 = vmatpush3.bf16.msra.mxu0 %v1472_v42 }
  0x3c   : > { %1316 = vmatprep.subr.bf16.mxu0 %v1473_v43  ;;  %1339 = vmatpush3.bf16.msra.mxu1 %v1843_v50 }
  0x3d   : > { %1340 = vmatprep.subr.bf16.mxu1 %v1850_v51 }
  0x3f   : > { %1317 = vmatpush3.bf16.msra.mxu0 %v1473_v43 }
  0x40   : > { %1318 = vmatprep.subr.bf16.mxu0 %v1474_v44  ;;  %1341 = vmatpush3.bf16.msra.mxu1 %v1850_v51 }
  0x41   : > { %1342 = vmatprep.subr.bf16.mxu1 %v1857_v52 }
  0x43   : > { %1319 = vmatpush3.bf16.msra.mxu0 %v1474_v44 }
  0x44   : > { %1320 = vmatprep.subr.bf16.mxu0 %v1475_v45  ;;  %1343 = vmatpush3.bf16.msra.mxu1 %v1857_v52 }
  0x45   : > { %1344 = vmatprep.subr.bf16.mxu1 %v1864_v53 }
  0x47   : > { %1321 = vmatpush3.bf16.msra.mxu0 %v1475_v45 }
  0x48   : > { %1322 = vmatprep.subr.bf16.mxu0 %v1476_v46  ;;  %1345 = vmatpush3.bf16.msra.mxu1 %v1864_v53 }
  0x4b   : > { %1323 = vmatpush3.bf16.msra.mxu0 %v1476_v46 }
  0x4c   : > { %1324 = vmatprep.subr.bf16.mxu0 %v1477_v47 }
  0x4f   : > { %1325 = vmatpush3.bf16.msra.mxu0 %v1477_v47 }
  0xb7   : > { %v354_v8 = vpop.xlane.xlu0 %353  ;;  %v358_v9 = vpop.xlane.xlu1 %357 }
  0xb8   : > { %v370_v10 = vmul.f32 0.0078125, %v354_v8  ;;  %v372_v11 = vmul.f32 0.0078125, %v358_v9 }
  0xba   : > { %v1771_v12 = vsub.f32 %v345_v0, %v370_v10  ;;  %v1773_v13 = vsub.f32 %v347_v1, %v372_v11 }
  0xbb   : > { %v356_v14 = vpop.xlane.xlu0 %355  ;;  %v360_v15 = vpop.xlane.xlu1 %359 }
  0xbc   : > { %v371_v16 = vmul.f32 0.0078125, %v356_v14  ;;  %v386_v17 = vmul.f32 %v1771_v12, %v1771_v12  ;;  %v373_v18 = vmul.f32 0.0078125, %v360_v15  ;;  %v388_v21 = vmul.f32 %v1773_v13, %v1773_v13 }
  0xbe   : > { %v1777_v19 = vsub.f32 %v346_v2, %v371_v16  ;;  %394 = vadd.xlane.f32.xlu0 %v386_v17  ;;  %v1779_v20 = vsub.f32 %v348_v3, %v373_v18  ;;  %v1190_v18 = vld [vmem:[%s2018_s1] ss:$0 sm:$0xff] }
  0xbf   : > { %v362_v22 = vpop.xlane.xlu0 %361  ;;  %v364_v23 = vpop.xlane.xlu1 %363 }
  0xc0   : > { %v374_v24 = vmul.f32 0.0078125, %v362_v22  ;;  %v387_v25 = vmul.f32 %v1777_v19, %v1777_v19  ;;  %v375_v26 = vmul.f32 0.0078125, %v364_v23  ;;  %v389_v29 = vmul.f32 %v1779_v20, %v1779_v20 }
  0xc2   : > { %v1785_v27 = vsub.f32 %v349_v4, %v374_v24  ;;  %398 = vadd.xlane.f32.xlu0 %v388_v21  ;;  %396 = vadd.xlane.f32.xlu1 %v387_v25  ;;  %v1787_v28 = vsub.f32 %v350_v5, %v375_v26  ;;  %v1191_v25 = vld [vmem:[%s2019_s2] ss:$0 sm:$0xff] }
  0xc3   : > { %v366_v30 = vpop.xlane.xlu0 %365  ;;  %v368_v31 = vpop.xlane.xlu1 %367 }
  0xc4   : > { %v376_v32 = vmul.f32 0.0078125, %v366_v30  ;;  %v390_v33 = vmul.f32 %v1785_v27, %v1785_v27  ;;  %v377_v34 = vmul.f32 0.0078125, %v368_v31  ;;  %v391_v37 = vmul.f32 %v1787_v28, %v1787_v28 }
  0xc6   : > { %v1793_v35 = vsub.f32 %v351_v6, %v376_v32  ;;  %400 = vadd.xlane.f32.xlu1 %v389_v29  ;;  %402 = vadd.xlane.f32.xlu0 %v390_v33  ;;  %v1795_v36 = vsub.f32 %v352_v7, %v377_v34 }
  0xc8   : > { %v392_v38 = vmul.f32 %v1793_v35, %v1793_v35  ;;  %v393_v40 = vmul.f32 %v1795_v36, %v1795_v36 }
  0xca   : > { %404 = vadd.xlane.f32.xlu1 %v391_v37  ;;  %406 = vadd.xlane.f32.xlu0 %v392_v38 }
  0xce   : > { %408 = vadd.xlane.f32.xlu1 %v393_v40 }
 0x147   : > { %v395_v54 = vpop.xlane.xlu0 %394 }
 0x148   : > { %v410_v55 = vmul.f32 0.0078125, %v395_v54 }
 0x14a   : > { %v418_v56 = vadd.f32 1e-05, %v410_v55 }
 0x14b   : > { %v397_v57 = vpop.xlane.xlu1 %396  ;;  %v399_v58 = vpop.xlane.xlu0 %398 }
 0x14c   : > { %1486 = vrsqrt.f32 %v418_v56  ;;  %v411_v59 = vmul.f32 0.0078125, %v397_v57  ;;  %v412_v60 = vmul.f32 0.0078125, %v399_v58 }
 0x14e   : > { %v419_v61 = vadd.f32 1e-05, %v411_v59  ;;  %v420_v62 = vadd.f32 1e-05, %v412_v60 }
 0x14f   : > { %v401_v63 = vpop.xlane.xlu1 %400  ;;  %v403_v0 = vpop.xlane.xlu0 %402 }
 0x150   : > { %1488 = vrsqrt.f32 %v419_v61  ;;  %v413_v1 = vmul.f32 0.0078125, %v401_v63  ;;  %v414_v2 = vmul.f32 0.0078125, %v403_v0 }
 0x151   : > { %1490 = vrsqrt.f32 %v420_v62 }
 0x152   : > { %v421_v3 = vadd.f32 1e-05, %v413_v1  ;;  %v422_v4 = vadd.f32 1e-05, %v414_v2 }
 0x153   : > { %v405_v5 = vpop.xlane.xlu1 %404  ;;  %v407_v6 = vpop.xlane.xlu0 %406 }
 0x154   : > { %1492 = vrsqrt.f32 %v421_v3  ;;  %v415_v7 = vmul.f32 0.0078125, %v405_v5  ;;  %v416_v8 = vmul.f32 0.0078125, %v407_v6 }
 0x155   : > { %1494 = vrsqrt.f32 %v422_v4 }
 0x156   : > { %v423_v9 = vadd.f32 1e-05, %v415_v7  ;;  %v424_v10 = vadd.f32 1e-05, %v416_v8 }
 0x157   : > { %v409_v11 = vpop.xlane.xlu1 %408 }
 0x158   : > { %1496 = vrsqrt.f32 %v423_v9  ;;  %v417_v14 = vmul.f32 0.0078125, %v409_v11 }
 0x159   : > { %v1487_v15 = vpop.eup %1486  ;;  %1498 = vrsqrt.f32 %v424_v10 }
 0x15a   : > { %v425_v16 = vadd.f32 1e-05, %v417_v14  ;;  %v434_v17 = vmul.f32 %v1487_v15, %v1771_v12 }
 0x15c   : > { %1500 = vrsqrt.f32 %v425_v16  ;;  %v449_v24 = vmul.f32 %v1190_v18, %v434_v17 }
 0x15d   : > { %v1489_v21 = vpop.eup %1488 }
 0x15e   : > { %v1491_v22 = vpop.eup %1490  ;;  %v435_v23 = vmul.f32 %v1489_v21, %v1777_v19  ;;  %v464_v12 = vadd.f32 %v1191_v25, %v449_v24 }
 0x15f   : > { %v436_v26 = vmul.f32 %v1491_v22, %v1773_v13 }
 0x160   : > { %v450_v29 = vmul.f32 %v1190_v18, %v435_v23 }
 0x161   : > { %v1493_v30 = vpop.eup %1492  ;;  %v451_v34 = vmul.f32 %v1190_v18, %v436_v26 }
 0x162   : > { %v1495_v31 = vpop.eup %1494  ;;  %v465_v32 = vadd.f32 %v1191_v25, %v450_v29  ;;  %v437_v33 = vmul.f32 %v1493_v30, %v1779_v20 }
 0x163   : > { %v438_v37 = vmul.f32 %v1495_v31, %v1785_v27  ;;  %v466_v41 = vadd.f32 %v1191_v25, %v451_v34 }
 0x164   : > { %v472_v38 = vpack.c.bf16 %v465_v32, %v464_v12  ;;  %v452_v39 = vmul.f32 %v1190_v18, %v437_v33 }
 0x165   : > { %v1497_v19 = vpop.eup %1496  ;;  %v453_v13 = vmul.f32 %v1190_v18, %v438_v37 }
 0x166   : > { %v1499_v40 = vpop.eup %1498  ;;  %1326 = vmatprep.mubr.bf16.mxu0 %v472_v38  ;;  %v467_v42 = vadd.f32 %v1191_v25, %v452_v39  ;;  %v439_v43 = vmul.f32 %v1497_v19, %v1787_v28  ;;  %v1484_v28 = vld [vmem:[%s2021_s4 + $0x8] sm:$0xff]  }
 0x167   : > { %v440_v44 = vmul.f32 %v1499_v40, %v1793_v35  ;;  %v468_v20 = vadd.f32 %v1191_v25, %v453_v13  ;;  %1346 = vmatprep.subr.bf16.mxu1 %v1484_v28  ;;  %v1485_v35 = vld [vmem:[%s2021_s4] sm:$0xff]  }
 0x168   : > { %v473_v45 = vpack.c.bf16 %v467_v42, %v466_v41  ;;  %v454_v46 = vmul.f32 %v1190_v18, %v439_v43  ;;  %1347 = vmatpush3.bf16.msra.mxu1 %v1484_v28 }
 0x169   : > { %v1501_v47 = vpop.eup %1500  ;;  %v455_v55 = vmul.f32 %v1190_v18, %v440_v44  ;;  %1348 = vmatprep.subr.bf16.mxu1 %v1485_v35 }
 0x16a   : > { %1327 = vmatmul.mubr.bf16.vlgmr.msra.gmra.mxu0 %v473_v45  ;;  %v469_v54 = vadd.f32 %v1191_v25, %v454_v46  ;;  %v441_v27 = vmul.f32 %v1501_v47, %v1795_v36  ;;  %v621_v36 = vld [vmem:[%s2022_s5] sm:$0x3] }
 0x16b   : > { %v470_v58 = vadd.f32 %v1191_v25, %v455_v55  ;;  %1402 = vmatprep.subr.msk.bf16.mxu0 %vm756_vm0, %v621_v36  ;;  %v758_v61 = vsel %vm756_vm0, %v621_v36, 0 }
 0x16c   : > { %v474_v56 = vpack.c.bf16 %v469_v54, %v468_v20  ;;  %v456_v57 = vmul.f32 %v1190_v18, %v441_v27  ;;  %1349 = vmatpush3.bf16.msra.mxu1 %v1485_v35  ;;  %1359 = vmatpush3.bf16.msra.mxu0 %v758_v61 }
 0x16d   : > { %1368 = vmatprep.subr.bf16.mxu1 %v1830_v48  ;;  %1403 = vmatprep.subr.msk.bf16.mxu0 %vm756_vm0, %v621_v36 }
 0x16e   : > { %1330 = vmatprep.mubr.bf16.mxu0 %v474_v56  ;;  %v471_v59 = vadd.f32 %v1191_v25, %v456_v57 }
 0x170   : > { %v475_v60 = vpack.c.bf16 %v471_v59, %v470_v58 }
 0x172   : > { %1331 = vmatmul.mubr.bf16.gmra.mxu0 %v475_v60 }
 0x22a   : > { %v1328_v62 = vpop.f32.mrf.mxu0 }
 0x22c   : > { %v574_v63 = vpop.f32.mrf.mxu0 }
 0x22e   : > { %v1329_v0 = vpop.f32.mrf.mxu0 }
 0x22f   : > { %v623_v3 = vpack.c.bf16 %v1329_v0, %v1328_v62 }
 0x230   : > { %v577_v1 = vpop.f32.mrf.mxu0 }
 0x231   : > { %v622_v2 = vpack.c.bf16 %v577_v1, %v574_v63 }
 0x232   : > { %v1893_v4 = vpop.f32.mrf.mxu0 }
 0x233   : > { %1350 = vmatprep.mubr.bf16.mxu1 %v622_v2 }
 0x234   : > { %v590_v5 = vpop.f32.mrf.mxu0  ;;  %1351 = vmatmul.mubr.bf16.vlgmr.msra.gmra.mxu1 %v623_v3 }
 0x235   : > { %1369 = vmatpush3.bf16.msra.mxu1 %v1830_v48 }
 0x236   : > { %v1333_v6 = vpop.f32.mrf.mxu0  ;;  %1370 = vmatprep.subr.bf16.mxu1 %v1835_v49 }
 0x237   : > { %v625_v9 = vpack.c.bf16 %v1333_v6, %v1893_v4 }
 0x238   : > { %v593_v7 = vpop.f32.mrf.mxu0 }
 0x239   : > { %v624_v8 = vpack.c.bf16 %v593_v7, %v590_v5  ;;  %1371 = vmatpush3.bf16.msra.mxu1 %v1835_v49 }
 0x23a   : > { %1372 = vmatprep.subr.bf16.mxu1 %v1843_v50 }
 0x23b   : > { %1354 = vmatprep.mubr.bf16.mxu1 %v624_v8 }
 0x23c   : > { %1355 = vmatmul.mubr.bf16.gmra.mxu1 %v625_v9 }
 0x23d   : > { %1373 = vmatpush3.bf16.msra.mxu1 %v1843_v50 }
 0x23e   : > { %1374 = vmatprep.subr.bf16.mxu1 %v1850_v51 }
 0x241   : > { %1375 = vmatpush3.bf16.msra.mxu1 %v1850_v51 }
 0x242   : > { %1376 = vmatprep.subr.bf16.mxu1 %v1857_v52 }
 0x245   : > { %1377 = vmatpush3.bf16.msra.mxu1 %v1857_v52 }
 0x246   : > { %1378 = vmatprep.subr.bf16.mxu1 %v1864_v53 }
 0x249   : > { %1379 = vmatpush3.bf16.msra.mxu1 %v1864_v53 }
 0x24a   : > { %1380 = vmatprep.subr.bf16.mxu1 %v1484_v28 }
 0x24d   : > { %1381 = vmatpush3.bf16.msra.mxu1 %v1484_v28 }
 0x24e   : > { %1382 = vmatprep.subr.bf16.mxu1 %v1485_v35 }
 0x251   : > { %1383 = vmatpush3.bf16.msra.mxu1 %v1485_v35 }
 0x2f4   : > { %v1352_v48 = vpop.f32.mrf.mxu1 }
 0x2f6   : > { %v708_v49 = vpop.f32.mrf.mxu1 }
 0x2f8   : > { %v1353_v10 = vpop.f32.mrf.mxu1 }
 0x2f9   : > { %v740_v14 = vpack.c.bf16 %v1353_v10, %v1352_v48 }
 0x2fa   : > { %v711_v50 = vpop.f32.mrf.mxu1 }
 0x2fb   : > { %v739_v11 = vpack.c.bf16 %v711_v50, %v708_v49 }
 0x2fc   : > { %v1356_v51 = vpop.f32.mrf.mxu1 }
 0x2fd   : > { %1360 = vmatprep.mubr.msk.bf16.mxu0 %vm743_vm1, %v739_v11 }
 0x2fe   : > { %v724_v15 = vpop.f32.mrf.mxu1  ;;  %1361 = vmatmul.mubr.msk.bf16.vlgmr.msra.gmra.mxu0 %vm743_vm1, %v740_v14 }
 0x2ff   : > { %1393 = vmatpush3.bf16.msra.mxu0 %v758_v61 }
 0x300   : > { %v1357_v52 = vpop.f32.mrf.mxu1 }
 0x301   : > { %v742_v17 = vpack.c.bf16 %v1357_v52, %v1356_v51 }
 0x302   : > { %v727_v53 = vpop.f32.mrf.mxu1 }
 0x303   : > { %v741_v16 = vpack.c.bf16 %v727_v53, %v724_v15  ;;  %v1216_v15 = vld [vmem:[%s2023_s6] ss:$0 sm:$0xff] }
 0x305   : > { %1364 = vmatprep.mubr.msk.bf16.mxu0 %vm743_vm1, %v741_v16 }
 0x306   : > { %1365 = vmatmul.mubr.msk.bf16.gmra.mxu0 %vm743_vm1, %v742_v17 }
 0x3be   : > { %v1362_v18 = vpop.f32.mrf.mxu0 }
 0x3bf   : > { %v1915_v25 = vsub.f32 %v1328_v62, %v1362_v18 }
 0x3c0   : > { %v794_v21 = vpop.f32.mrf.mxu0 }
 0x3c1   : > { %v1911_v23 = vsub.f32 %v574_v63, %v794_v21  ;;  %v835_v33 = vmul.f32 %v1915_v25, %v1915_v25  ;;  %v1217_v21 = vld [vmem:[%s2024_s7] ss:$0 sm:$0xff] }
 0x3c2   : > { %v1363_v22 = vpop.f32.mrf.mxu0 }
 0x3c3   : > { %v1913_v24 = vsub.f32 %v1329_v0, %v1363_v22  ;;  %v833_v12 = vmul.f32 %v1911_v23, %v1911_v23 }
 0x3c4   : > { %v797_v26 = vpop.f32.mrf.mxu0 }
 0x3c5   : > { %v1917_v29 = vsub.f32 %v577_v1, %v797_v26  ;;  %v836_v30 = vmul.f32 %v1913_v24, %v1913_v24 }
 0x3c6   : > { %v1366_v31 = vpop.f32.mrf.mxu0 }
 0x3c7   : > { %v834_v32 = vmul.f32 %v1917_v29, %v1917_v29  ;;  %v842_v38 = vpack.c.bf16 %v836_v30, %v835_v33  ;;  %v1932_v41 = vsub.f32 %v1893_v4, %v1366_v31 }
 0x3c8   : > { %v810_v34 = vpop.f32.mrf.mxu0 }
 0x3c9   : > { %v841_v37 = vpack.c.bf16 %v834_v32, %v833_v12  ;;  %v1927_v19 = vsub.f32 %v590_v5, %v810_v34  ;;  %v839_v46 = vmul.f32 %v1932_v41, %v1932_v41 }
 0x3ca   : > { %v1367_v39 = vpop.f32.mrf.mxu0 }
 0x3cb   : > { %v1929_v40 = vsub.f32 %v1333_v6, %v1367_v39  ;;  %1384 = vmatprep.mubr.bf16.mxu1 %v841_v37  ;;  %v837_v44 = vmul.f32 %v1927_v19, %v1927_v19 }
 0x3cc   : > { %v813_v42 = vpop.f32.mrf.mxu0  ;;  %1385 = vmatmul.mubr.bf16.vlgmr.msra.gmra.mxu1 %v842_v38 }
 0x3cd   : > { %v1934_v43 = vsub.f32 %v593_v7, %v813_v42  ;;  %v840_v13 = vmul.f32 %v1929_v40, %v1929_v40 }
 0x3cf   : > { %v838_v45 = vmul.f32 %v1934_v43, %v1934_v43  ;;  %v844_v20 = vpack.c.bf16 %v840_v13, %v839_v46 }
 0x3d1   : > { %v843_v47 = vpack.c.bf16 %v838_v45, %v837_v44 }
 0x3d3   : > { %1388 = vmatprep.mubr.bf16.mxu1 %v843_v47 }
 0x3d4   : > { %1389 = vmatmul.mubr.bf16.gmra.mxu1 %v844_v20 }
 0x48c   : > { %v1386_v54 = vpop.f32.mrf.mxu1 }
 0x48e   : > { %v879_v27 = vpop.f32.mrf.mxu1 }
 0x490   : > { %v1387_v55 = vpop.f32.mrf.mxu1 }
 0x491   : > { %v911_v58 = vpack.c.bf16 %v1387_v55, %v1386_v54 }
 0x492   : > { %v882_v56 = vpop.f32.mrf.mxu1 }
 0x493   : > { %v910_v57 = vpack.c.bf16 %v882_v56, %v879_v27 }
 0x494   : > { %v1390_v59 = vpop.f32.mrf.mxu1 }
 0x495   : > { %1394 = vmatprep.mubr.msk.bf16.mxu0 %vm743_vm1, %v910_v57 }
 0x496   : > { %v895_v60 = vpop.f32.mrf.mxu1  ;;  %1395 = vmatmul.mubr.msk.bf16.vlgmr.msra.gmra.mxu0 %vm743_vm1, %v911_v58 }
 0x498   : > { %v1391_v28 = vpop.f32.mrf.mxu1 }
 0x499   : > { %v913_v61 = vpack.c.bf16 %v1391_v28, %v1390_v59 }
 0x49a   : > { %v898_v35 = vpop.f32.mrf.mxu1 }
 0x49b   : > { %v912_v36 = vpack.c.bf16 %v898_v35, %v895_v60 }
 0x49d   : > { %1398 = vmatprep.mubr.msk.bf16.mxu0 %vm743_vm1, %v912_v36 }
 0x49e   : > { %1399 = vmatmul.mubr.msk.bf16.gmra.mxu0 %vm743_vm1, %v913_v61 }
 0x556   : > { %v1396_v62 = vpop.f32.mrf.mxu0 }
 0x557   : > { %v969_v63 = vadd.f32 1e-06, %v1396_v62 }
 0x558   : > { %v960_v0 = vpop.f32.mrf.mxu0 }
 0x559   : > { %1502 = vrsqrt.f32 %v969_v63  ;;  %v961_v1 = vadd.f32 1e-06, %v960_v0 }
 0x55a   : > { %v1397_v2 = vpop.f32.mrf.mxu0 }
 0x55b   : > { %1504 = vrsqrt.f32 %v961_v1  ;;  %v972_v3 = vadd.f32 1e-06, %v1397_v2 }
 0x55c   : > { %v963_v4 = vpop.f32.mrf.mxu0 }
 0x55d   : > { %1506 = vrsqrt.f32 %v972_v3  ;;  %v964_v5 = vadd.f32 1e-06, %v963_v4 }
 0x55e   : > { %v1400_v6 = vpop.f32.mrf.mxu0 }
 0x55f   : > { %1508 = vrsqrt.f32 %v964_v5  ;;  %v985_v7 = vadd.f32 1e-06, %v1400_v6 }
 0x560   : > { %v976_v8 = vpop.f32.mrf.mxu0 }
 0x561   : > { %1510 = vrsqrt.f32 %v985_v7  ;;  %v977_v9 = vadd.f32 1e-06, %v976_v8 }
 0x562   : > { %v1401_v48 = vpop.f32.mrf.mxu0 }
 0x563   : > { %1512 = vrsqrt.f32 %v977_v9  ;;  %v988_v49 = vadd.f32 1e-06, %v1401_v48 }
 0x564   : > { %v979_v10 = vpop.f32.mrf.mxu0 }
 0x565   : > { %1514 = vrsqrt.f32 %v988_v49  ;;  %v980_v50 = vadd.f32 1e-06, %v979_v10 }
 0x566   : > { %v1503_v11 = vpop.eup %1502 }
 0x567   : > { %v1001_v14 = vmul.f32 %v1503_v11, %v1915_v25  ;;  %1516 = vrsqrt.f32 %v980_v50 }
 0x568   : > { %v1505_v51 = vpop.eup %1504 }
 0x569   : > { %v999_v52 = vmul.f32 %v1505_v51, %v1911_v23  ;;  %v1016_v16 = vmul.f32 %v1216_v15, %v1001_v14 }
 0x56a   : > { %v1507_v53 = vpop.eup %1506 }
 0x56b   : > { %v1002_v17 = vmul.f32 %v1507_v53, %v1913_v24  ;;  %v1014_v22 = vmul.f32 %v1216_v15, %v999_v52  ;;  %v1031_v31 = vadd.f32 %v1217_v21, %v1016_v16 }
 0x56c   : > { %v1509_v18 = vpop.eup %1508 }
 0x56d   : > { %v1017_v26 = vmul.f32 %v1216_v15, %v1002_v17  ;;  %v1000_v25 = vmul.f32 %v1509_v18, %v1917_v29  ;;  %v1029_v34 = vadd.f32 %v1217_v21, %v1014_v22 }
 0x56e   : > { %v1511_v30 = vpop.eup %1510 }
 0x56f   : > { %v1032_v12 = vadd.f32 %v1217_v21, %v1017_v26  ;;  %v1015_v32 = vmul.f32 %v1216_v15, %v1000_v25  ;;  %v1005_v23 = vmul.f32 %v1511_v30, %v1932_v41 }
 0x570   : > { %v1513_v33 = vpop.eup %1512 }
 0x571   : > { %v1249_v37 = vpack.c.bf16 %v1032_v12, %v1031_v31  ;;  %v1030_v24 = vadd.f32 %v1217_v21, %v1015_v32  ;;  %v1003_v38 = vmul.f32 %v1513_v33, %v1927_v19  ;;  %v1020_v13 = vmul.f32 %v1216_v15, %v1005_v23 }
 0x572   : > { %v1515_v39 = vpop.eup %1514 }
 0x573   : > { %v1244_v42 = vpack.c.bf16 %v1030_v24, %v1029_v34  ;;  %v1006_v44 = vmul.f32 %v1515_v39, %v1929_v40  ;;  %1261 = vst [vmem:[%s341_s12 + $0x8] sm:$0xff] %v1249_v37   ;;  %v1018_v45 = vmul.f32 %v1216_v15, %v1003_v38  ;;  %v1035_v47 = vadd.f32 %v1217_v21, %v1020_v13 }
 0x574   : > { %v1517_v29 = vpop.eup %1516 }
 0x575   : > { %v1021_v46 = vmul.f32 %v1216_v15, %v1006_v44  ;;  %v1004_v41 = vmul.f32 %v1517_v29, %v1934_v43  ;;  %1245 = vst [vmem:[%s341_s12] sm:$0xff] %v1244_v42   ;;  %v1033_v19 = vadd.f32 %v1217_v21, %v1018_v45 }
 0x577   : > { %v1036_v20 = vadd.f32 %v1217_v21, %v1021_v46  ;;  %v1019_v54 = vmul.f32 %v1216_v15, %v1004_v41 }
 0x579   : > { %v1259_v27 = vpack.c.bf16 %v1036_v20, %v1035_v47  ;;  %v1034_v55 = vadd.f32 %v1217_v21, %v1019_v54 }
 0x57b   : > { %v1254_v40 = vpack.c.bf16 %v1034_v55, %v1033_v19  ;;  %1263 = vst [vmem:[%s341_s12 + $0x18] sm:$0xff] %v1259_v27  }
 0x57d   : > { %1262 = vst [vmem:[%s341_s12 + $0x10] sm:$0xff] %v1254_v40  }
 0x57e   : > { %1559 = shalt.err (!%p1556_p6)
}
 0x57f   : > { %s1560_s26 = scalar_lea.hbm %s1967_s21, 512  ;;  %s1564_s12 = scalar_lea.hbm %s2025_s8, 1024 }
 0x580   : > { %p1561_p7 = scmp.ne.s32.totalorder %s1967_s21, %s1560_s26  ;;  %p1565_p13 = scmp.lt.s32.totalorder %s1967_s21, %s2025_s8 }
 0x581   : > { %p1566_p2 = scmp.lt.s32.totalorder %s1564_s12, %s1560_s26 }
 0x582   : > { %p1562_p10 = pnand %p1561_p7, %p1730_p9 }
 0x583   : > { %p1567_p8 = por %p1566_p2, %p1565_p13 }
 0x584   : > { %p1563_p4 = pneg %p1562_p10 }
 0x586   : > { %p1568_p12 = pnand %p1567_p8, %p1563_p4 }
 0x588   : > { %1571 = shalt.err (!%p1568_p12)
}
 0x589   : > { %s1632_s15 = smov 64   ;;  %s1633_s23 = smov 4  }
 0x58a   : > { %1406 = dma.vmem_to_hbm [thread:$0]  (%p1730_p9), %s1969_s24, 512, %s1967_s21, %s1078_s13, %s1632_s15, %s1632_s15, %s1633_s23  }
 0x58b PF: > { %s1108_s30 = sand.u32 1, %s1606_s27   ;;  %p2035_p0 = scmp.ge.s32.totalorder %s1626_s10, 2 }
 0x58c   : > { %s1109_s25 = scalar_lea.sflag [#allocation4], %s1108_s30 }
 0x58d   : > { %p1413_p1 = pnand %p2035_p0, %p1737_p11 }
 0x58f   : > { %p1414_p3 = pneg %p1413_p1 }
 0x591   : > { %1601 = dma.done.wait (%p1414_p3), %s1109_s25, 512  }
 0x592   : > { %1603 = vsyncadd (%p1414_p3), %s1109_s25, 4294966784  ;;  %s24_s10 = sadd.s32 1, %s1626_s10   ;;  %s2036_s30 = sld [smem:[#allocation8_spill]] }
 0x593   : > { %p21_p5 = scmp.ge.s32.totalorder %s24_s10, 4   ;;  %s2037_s9 = sld [smem:[#allocation9_spill]] }
 0x594   : > { %s2038_s27 = smov %s1610_s28  ;;  %s2039_s28 = smov %s1614_s29 }
 0x595   : > { %s2040_s29 = smov %s1735_s19  ;;  %23 = sbr.rel (!%p21_p5) target bundleno = 6 (0x6), region = 97 }
 0x59a   :  { %1114 = vsyncpa [#allocation3], 1 }
 0x59b   :  { %1116 = vsyncpa [#allocation3 + $0x1], 1 }
 0x59c   :  { %1117 = vsyncpa [#allocation4], 1 }
 0x59d   :  { %1119 = vsyncpa [#allocation4 + $0x1], 1 }

</bundles_post_ra>
